<compile_context>
chip_gen: v7x
topology: tpu7x:2x2x1
jax: 0.10.0
libtpu: 0.0.40
codegen_flags: <defaults>
</compile_context>

<pallas_src>
import jax
import jax.numpy as jnp
from jax.experimental import pallas as pl
from jax.experimental.pallas import tpu as pltpu


def _attention_kernel(h_ref, eo_ref, wd_ref, we_ref, out_ref):
    # h  : (Dd, TB)    last decoder hidden state, batch on the LANE axis
    # eo : (F, TB, De) encoder outputs in their NATIVE layout (no HBM transpose)
    # wd : (Dd, 1)     decoder-side slice of the Linear weight
    # we : (1, De)     encoder-side slice of the Linear weight
    # out: (F, TB)     softmax over F, batch stays on lanes (lane-dense store)
    h = h_ref[...].astype(jnp.float32)
    wd = wd_ref[...].astype(jnp.float32)
    we = we_ref[...].astype(jnp.float32)

    # Linear (no bias) applied to cat((hidden_rep, enc_out), -1), split
    # algebraically so the repeated hidden state is never materialized:
    #   score[f, b] = <h[:, b], wd> + <eo[f, b, :], we>
    # Width-1 contractions stay on the VPU/XLU (multiply + reduce), OFF the MXU.
    dec_score = jnp.sum(h * wd, axis=0, keepdims=True)          # (1, TB) lane vector

    f_dim = eo_ref.shape[0]                                     # static, tiny (3..8)
    rows = []
    for f in range(f_dim):
        # Per-F slice keeps the peak live f32 intermediate at ~(TB, De)
        # instead of (F, TB, De).
        eo_f = eo_ref[f].astype(jnp.float32)                    # (TB, De)
        rows.append(jnp.sum(eo_f * we, axis=-1)[None, :])       # (1, TB) lane reduce
    enc_score = jnp.concatenate(rows, axis=0)                   # (F, TB)

    logits = jnp.tanh(enc_score + dec_score)                    # (F, TB)

    # Numerically stable softmax over F (sublane axis, F <= 8); reciprocal on
    # the EUP.  approx=True trades a few ULPs of normalization accuracy.
    m = jnp.max(logits, axis=0, keepdims=True)                  # (1, TB)
    ex = jnp.exp(logits - m)
    denom = jnp.sum(ex, axis=0, keepdims=True)                  # (1, TB)
    out_ref[...] = (ex * pl.reciprocal(denom, approx=True)).astype(out_ref.dtype)


def _round_up(x, m):
    return ((x + m - 1) // m) * m


def _pick_batch_tile(B, F, De, Dd, in_itemsize,
                     vmem_budget_bytes=20 * 1024 * 1024):
    """Pick the batch tile (lane axis) for the kernel.

    Accounts for the real (8,128)-tiled VMEM footprint of each block:
      * lane padding of the eo block's last dim (De -> ceil(De/128)*128),
      * sublane packing (8 rows for 4-byte dtypes, 16 for 2-byte),
      * 2x double buffering on every auto-pipelined operand,
      * headroom for in-kernel f32 intermediates (slice / product / logits).
    The 20 MiB budget stays inside the 32 MiB scoped VMEM limit, which is safe
    on v5e, v6e and v7x (v7x has only 64 MiB physical VMEM per TensorCore).
    """
    lane = 128
    sub = 16 if in_itemsize < 4 else 8
    de_pad = _round_up(De, lane)
    per_b = (
        2 * F * de_pad * in_itemsize             # eo block, double-buffered, lane-padded
        + 2 * _round_up(Dd, sub) * in_itemsize   # (Dd, tb) hidden block, double-buffered
        + 2 * _round_up(F, 8) * 4                # (F, tb) f32 output block, double-buffered
        + 8 * lane * 4                           # headroom: f32 intermediates / spills
    )
    max_tb = max(lane, (vmem_budget_bytes // per_b) // lane * lane)

    if B <= max_tb and B <= 1024:
        # Launch-overhead dominated regime: one full-batch block, grid=(1,).
        # Block dims equal the full array dims, so no (8,128) / lane-multiple
        # constraints apply (covers odd small B and bf16 sublane packing).
        return B

    # Large batch: lane-dense tiles (multiple of 128 -> unmasked stores and
    # bf16-safe sublane packing), MiB-scale eo DMAs per grid step, and at least
    # two grid steps so dimension_semantics=("parallel",) can shard the batch
    # across both TensorCores on v7x.
    tb = min(max_tb, 2048)
    tb = min(tb, max(lane, _round_up(pl.cdiv(B, 2), lane)))
    return max(lane, tb)


def attention_forward(hidden, encoder_outputs, attn_weight, *, batch_tile=None):
    """hidden: [L, B, Dd]; encoder_outputs: [F, B, De] (native layout, NOT
    transposed); attn_weight: [1, Dd + De] = nn.Linear(dec+enc, 1, bias=False).weight.
    Returns softmax attention weights of shape [B, F] (matches the PyTorch module)."""
    L, B, Dd = hidden.shape
    F, B2, De = encoder_outputs.shape
    assert B == B2
    assert attn_weight.shape == (1, Dd + De)

    # Tiny operands: put the batch on the lane axis for the kernel.
    h_t = jnp.transpose(hidden[-1], (1, 0))          # (Dd, B)  -- tiny transpose
    # cat order in the reference is (hidden_rep, encoder_outputs) -> split weight.
    w_dec = attn_weight[:, :Dd].reshape(Dd, 1)       # (Dd, 1)
    w_enc = attn_weight[:, Dd:]                      # (1, De)

    itemsize = jnp.dtype(encoder_outputs.dtype).itemsize
    tb = batch_tile if batch_tile is not None else _pick_batch_tile(
        B, F, De, Dd, itemsize)
    grid = (pl.cdiv(B, tb),)                         # ragged last block is fine

    cost = pl.CostEstimate(
        flops=2 * B * F * De + 2 * B * Dd + 5 * B * F,
        transcendentals=2 * B * F,                                # tanh + exp
        bytes_accessed=itemsize * (B * F * De + B * Dd + Dd + De) + 4 * B * F,
    )

    out_fb = pl.pallas_call(
        _attention_kernel,
        out_shape=jax.ShapeDtypeStruct((F, B), jnp.float32),      # lane-dense (F, B)
        grid_spec=pl.GridSpec(
            grid=grid,
            in_specs=[
                pl.BlockSpec((Dd, tb), lambda i: (0, i)),         # hidden[-1]^T tile
                pl.BlockSpec((F, tb, De), lambda i: (0, i, 0)),   # eo, native [F,B,De]
                pl.BlockSpec((Dd, 1), lambda i: (0, 0)),          # w_dec (resident)
                pl.BlockSpec((1, De), lambda i: (0, 0)),          # w_enc (resident)
            ],
            out_specs=pl.BlockSpec((F, tb), lambda i: (0, i)),
        ),
        compiler_params=pltpu.CompilerParams(
            dimension_semantics=("parallel",),     # batch tiles are independent
            vmem_limit_bytes=32 * 1024 * 1024,     # safe on v5e/v6e/v7x
        ),
        cost_estimate=cost,
    )(h_t, encoder_outputs, w_dec, w_enc)

    # Tiny (F, B) -> (B, F) transpose in the wrapper to match the PyTorch API.
    return jnp.transpose(out_fb, (1, 0))


def _reference(hidden, encoder_outputs, attn_weight):
    """Pure-JAX transcription of the PyTorch forward, for a sanity check."""
    F = encoder_outputs.shape[0]
    h = jnp.repeat(hidden[-1][:, None, :], F, axis=1)        # (B, F, Dd)
    eo = jnp.transpose(encoder_outputs, (1, 0, 2))           # (B, F, De)
    cat = jnp.concatenate([h, eo], axis=2)                   # (B, F, Dd+De)
    energy = jnp.tanh(cat @ attn_weight.T)                   # (B, F, 1)
    return jax.nn.softmax(energy[..., 0], axis=1)            # (B, F)


if __name__ == "__main__":
    # Small shapes consistent with the module: the encoder stacks exactly the
    # user / item / rating embeddings -> feature_len = 3.
    num_layers = 2
    batch = 2
    feature_len = 3
    enc_hid_dim = 32
    dec_hid_dim = 32

    key = jax.random.PRNGKey(0)
    k_h, k_e, k_w = jax.random.split(key, 3)

    hidden = jax.random.normal(k_h, (num_layers, batch, dec_hid_dim), jnp.float32)
    encoder_outputs = jax.random.normal(
        k_e, (feature_len, batch, enc_hid_dim), jnp.float32)

    # nn.Linear(enc+dec, 1, bias=False): weight shape [1, enc+dec],
    # uniform(-1/sqrt(fan_in), 1/sqrt(fan_in)) — deterministic synthetic init.
    fan_in = enc_hid_dim + dec_hid_dim
    bound = 1.0 / jnp.sqrt(jnp.float32(fan_in))
    attn_weight = jax.random.uniform(
        k_w, (1, fan_in), jnp.float32, minval=-bound, maxval=bound)

    out = attention_forward(hidden, encoder_outputs, attn_weight)
    out = jax.block_until_ready(out)

    ref = _reference(hidden, encoder_outputs, attn_weight)
    assert out.shape == (batch, feature_len)
    # Approx EUP reciprocal in the softmax epilogue trades a few ULPs (rows do
    # not sum to exactly 1); tolerance still catches structural / axis bugs.
    assert jnp.allclose(out, ref, atol=2e-3, rtol=2e-3), float(jnp.max(jnp.abs(out - ref)))

    print("KERNEL_OK")
</pallas_src>

<mosaic_0001>
module attributes {stable_mosaic.version = 11 : i64} {
  func.func @_attention_kernel(%arg0: i32, %arg1: memref<32x2xf32, #tpu.memory_space<vmem>>, %arg2: memref<3x2x32xf32, #tpu.memory_space<vmem>>, %arg3: memref<32x1xf32, #tpu.memory_space<vmem>>, %arg4: memref<1x32xf32, #tpu.memory_space<vmem>>, %arg5: memref<3x2xf32, #tpu.memory_space<vmem>>) attributes {dimension_semantics = [#tpu.dimension_semantics<parallel>], iteration_bounds = array<i64: 1>, scalar_prefetch = 0 : i64, scratch_operands = 0 : i64, tpu.core_type = #tpu.core_type<tc>, window_params = [{transform_indices = @transform_0, window_bounds = array<i64: 32, 2>}, {transform_indices = @transform_1, window_bounds = array<i64: 3, 2, 32>}, {pipeline_mode = #tpu.pipeline_mode<synchronous>, transform_indices = @transform_2, window_bounds = array<i64: 32, 1>}, {pipeline_mode = #tpu.pipeline_mode<synchronous>, transform_indices = @transform_3, window_bounds = array<i64: 1, 32>}, {transform_indices = @transform_4, window_bounds = array<i64: 3, 2>}]} {
    %c0 = arith.constant 0 : index
    %c0_0 = arith.constant 0 : index
    %0 = vector.load %arg1[%c0, %c0_0] : memref<32x2xf32, #tpu.memory_space<vmem>>, vector<32x2xf32>
    %c0_1 = arith.constant 0 : index
    %c0_2 = arith.constant 0 : index
    %1 = vector.load %arg3[%c0_1, %c0_2] : memref<32x1xf32, #tpu.memory_space<vmem>>, vector<32x1xf32>
    %c0_3 = arith.constant 0 : index
    %c0_4 = arith.constant 0 : index
    %2 = vector.load %arg4[%c0_3, %c0_4] : memref<1x32xf32, #tpu.memory_space<vmem>>, vector<1x32xf32>
    %3 = vector.broadcast %1 : vector<32x1xf32> to vector<32x2xf32>
    %4 = arith.mulf %0, %3 : vector<32x2xf32>
    %cst = arith.constant dense<0.000000e+00> : vector<2xf32>
    %5 = vector.multi_reduction <add>, %4, %cst [0] : vector<32x2xf32> to vector<2xf32>
    %6 = vector.shape_cast %5 : vector<2xf32> to vector<1x2xf32>
    %c0_5 = arith.constant 0 : index
    %c0_6 = arith.constant 0 : index
    %c0_7 = arith.constant 0 : index
    %7 = vector.load %arg2[%c0_5, %c0_6, %c0_7] : memref<3x2x32xf32, #tpu.memory_space<vmem>>, vector<1x2x32xf32>
    %8 = vector.shape_cast %7 : vector<1x2x32xf32> to vector<2x32xf32>
    %9 = vector.broadcast %2 : vector<1x32xf32> to vector<2x32xf32>
    %10 = arith.mulf %8, %9 : vector<2x32xf32>
    %cst_8 = arith.constant dense<0.000000e+00> : vector<2xf32>
    %11 = vector.multi_reduction <add>, %10, %cst_8 [1] : vector<2x32xf32> to vector<2xf32>
    %12 = vector.shape_cast %11 : vector<2xf32> to vector<1x2xf32>
    %c1 = arith.constant 1 : index
    %c0_9 = arith.constant 0 : index
    %c0_10 = arith.constant 0 : index
    %13 = vector.load %arg2[%c1, %c0_9, %c0_10] : memref<3x2x32xf32, #tpu.memory_space<vmem>>, vector<1x2x32xf32>
    %14 = vector.shape_cast %13 : vector<1x2x32xf32> to vector<2x32xf32>
    %15 = vector.broadcast %2 : vector<1x32xf32> to vector<2x32xf32>
    %16 = arith.mulf %14, %15 : vector<2x32xf32>
    %cst_11 = arith.constant dense<0.000000e+00> : vector<2xf32>
    %17 = vector.multi_reduction <add>, %16, %cst_11 [1] : vector<2x32xf32> to vector<2xf32>
    %18 = vector.shape_cast %17 : vector<2xf32> to vector<1x2xf32>
    %c2 = arith.constant 2 : index
    %c0_12 = arith.constant 0 : index
    %c0_13 = arith.constant 0 : index
    %19 = vector.load %arg2[%c2, %c0_12, %c0_13] : memref<3x2x32xf32, #tpu.memory_space<vmem>>, vector<1x2x32xf32>
    %20 = vector.shape_cast %19 : vector<1x2x32xf32> to vector<2x32xf32>
    %21 = vector.broadcast %2 : vector<1x32xf32> to vector<2x32xf32>
    %22 = arith.mulf %20, %21 : vector<2x32xf32>
    %cst_14 = arith.constant dense<0.000000e+00> : vector<2xf32>
    %23 = vector.multi_reduction <add>, %22, %cst_14 [1] : vector<2x32xf32> to vector<2xf32>
    %24 = vector.shape_cast %23 : vector<2xf32> to vector<1x2xf32>
    %25 = tpu.concatenate %12, %18, %24 in 0 : vector<1x2xf32>, vector<1x2xf32>, vector<1x2xf32> -> vector<3x2xf32>
    %26 = vector.broadcast %6 : vector<1x2xf32> to vector<3x2xf32>
    %27 = arith.addf %25, %26 : vector<3x2xf32>
    %28 = math.tanh %27 : vector<3x2xf32>
    %cst_15 = arith.constant dense<0xFF800000> : vector<2xf32>
    %29 = vector.multi_reduction <maximumf>, %28, %cst_15 [0] : vector<3x2xf32> to vector<2xf32>
    %30 = vector.shape_cast %29 : vector<2xf32> to vector<1x2xf32>
    %31 = vector.broadcast %30 : vector<1x2xf32> to vector<3x2xf32>
    %32 = arith.subf %28, %31 : vector<3x2xf32>
    %33 = math.exp %32 : vector<3x2xf32>
    %cst_16 = arith.constant dense<0.000000e+00> : vector<2xf32>
    %34 = vector.multi_reduction <add>, %33, %cst_16 [0] : vector<3x2xf32> to vector<2xf32>
    %35 = vector.shape_cast %34 : vector<2xf32> to vector<1x2xf32>
    %36 = tpu.reciprocal %35 {approx = true} : vector<1x2xf32> -> vector<1x2xf32>
    %37 = vector.broadcast %36 : vector<1x2xf32> to vector<3x2xf32>
    %38 = arith.mulf %33, %37 : vector<3x2xf32>
    %c0_17 = arith.constant 0 : index
    %c0_18 = arith.constant 0 : index
    %39 = vector.load %arg5[%c0_17, %c0_18] : memref<3x2xf32, #tpu.memory_space<vmem>>, vector<3x2xf32>
    tpu.vector_store %arg5[%c0_17, %c0_18], %38 {strides = array<i32>} : memref<3x2xf32, #tpu.memory_space<vmem>>, vector<3x2xf32>,
    return
  }
  func.func @transform_0(%arg0: i32) -> (i32, i32) {
    %c0_i32 = arith.constant 0 : i32
    %c0_i32_0 = arith.constant 0 : i32
    return %c0_i32, %arg0 : i32, i32
  }
  func.func @transform_1(%arg0: i32) -> (i32, i32, i32) {
    %c0_i32 = arith.constant 0 : i32
    %c0_i32_0 = arith.constant 0 : i32
    %c0_i32_1 = arith.constant 0 : i32
    return %c0_i32, %arg0, %c0_i32_0 : i32, i32, i32
  }
  func.func @transform_2(%arg0: i32) -> (i32, i32) {
    %c0_i32 = arith.constant 0 : i32
    %c0_i32_0 = arith.constant 0 : i32
    %c0_i32_1 = arith.constant 0 : i32
    return %c0_i32, %c0_i32_0 : i32, i32
  }
  func.func @transform_3(%arg0: i32) -> (i32, i32) {
    %c0_i32 = arith.constant 0 : i32
    %c0_i32_0 = arith.constant 0 : i32
    %c0_i32_1 = arith.constant 0 : i32
    return %c0_i32, %c0_i32_0 : i32, i32
  }
  func.func @transform_4(%arg0: i32) -> (i32, i32) {
    %c0_i32 = arith.constant 0 : i32
    %c0_i32_0 = arith.constant 0 : i32
    return %c0_i32, %arg0 : i32, i32
  }
}

</mosaic_0001>

<bundles_post_ra>
// kernel: tpu_custom_call.1
= control target key start
LH: loop header
LB: loop body
LE: loop exit
PB: predicated region body
PF: predicated region fallthrough
CT: control target
= control target key end

     0   :  { %v151_v0 = vmov 0   ;;  %vm72_vm0 = vcmask 254976   ;;  %vm50_vm1 = vcmask 15360   ;;  %v89_v36 = vlaneseq  ;;  %s219_s2 = inlined_call_operand.vmem [shape: f32[32,1], index: 2, kind: input, shape index: {}]   ;;  %s220_s1 = inlined_call_operand.vmem [shape: f32[3,2,32], index: 1, kind: input, shape index: {}]   ;;  %s221_s3 = inlined_call_operand.vmem [shape: f32[1,32], index: 3, kind: input, shape index: {}]   ;;  %s222_s0 = inlined_call_operand.vmem [shape: f32[32,2], index: 0, kind: input, shape index: {}]   ;;  %s223_s4 = inlined_call_operand.vmem [shape: f32[3,2], index: 4, kind: output, shape index: {}]  }
   0x1   :  { %144 = vset.pattern.permute.xlu1 %v151_v0  ;;  %143 = vset.pattern.permute.xlu0 %v151_v0  ;;  %v23_v1 = vld [vmem:[%s219_s2 + $0x10] sm:$0xff]  ;;  %v21_v2 = vld [vmem:[%s219_s2] sm:$0xff]  ;;  %v24_v3 = vld [vmem:[%s219_s2 + $0x18] sm:$0xff]  ;;  %vm108_vm2 = vcmask 1040384   ;;  %vm110_vm3 = vcmask 1041408   ;;  %vm114_vm4 = vcmask 10240  }
   0x2   :  { %38 = vperm.xlu1 %144, %v23_v1   ;;  %28 = vperm.xlu0 %143, %v21_v2   ;;  %v22_v4 = vld [vmem:[%s219_s2 + $0x8] sm:$0xff]  ;;  %v139_v5 = vld [vmem:[%s221_s3] ss:$0 sm:$0xff]  ;;  %v141_v8 = vld [vmem:[%s220_s1 + $0x4] sm:$0x3]  ;;  %v90_v38 = vand.u32 127, %v89_v36 }
   0x3   :  { %v64_v6 = vld [vmem:[%s220_s1] sm:$0x3]  ;;  %v140_v9 = vld [vmem:[%s220_s1 + $0x2] sm:$0x3]  ;;  %v84_v11 = vmul.f32 %v141_v8, %v139_v5  ;;  %v18_v17 = vld [vmem:[%s222_s0 + $0x8] sm:$0xff]  ;;  %v92_v39 = vshrl.u32 %v89_v36, 7 }
   0x4   :  { %v71_v7 = vmul.f32 %v139_v5, %v64_v6  ;;  %v78_v12 = vmul.f32 %v140_v9, %v139_v5  ;;  %v17_v18 = vld [vmem:[%s222_s0] sm:$0xff]  ;;  %v19_v22 = vld [vmem:[%s222_s0 + $0x10] sm:$0xff]  ;;  %v20_v27 = vld [vmem:[%s222_s0 + $0x18] sm:$0xff] }
   0x5   :  { %v85_v13 = vsel %vm72_vm0, %v84_v11, 0.0  ;;  %v93_v42 = vsub.s32 %v90_v38, %v92_v39 }
   0x6   :  { %43 = vperm.xlu1 %144, %v24_v3   ;;  %33 = vperm.xlu0 %143, %v22_v4   ;;  %v73_v10 = vsel %vm72_vm0, %v71_v7, 0.0  ;;  %v79_v14 = vsel %vm72_vm0, %v78_v12, 0.0 }
  0x25   :  { %74 = vadd.xlane.f32.xlu0 %v73_v10 }
  0x29   :  { %86 = vadd.xlane.f32.xlu0 %v85_v13 }
  0x2a   :  { %80 = vadd.xlane.f32.xlu1 %v79_v14 }
  0x81   :  { %v29_v15 = vpop.permute.xlu0 %28  ;;  %v39_v20 = vpop.permute.xlu1 %38 }
  0x82   :  { %v46_v21 = vmul.f32 %v29_v15, %v17_v18  ;;  %v48_v24 = vmul.f32 %v39_v20, %v19_v22 }
  0x84   :  { %v51_v25 = vsel %vm50_vm1, %v46_v21, 0.0  ;;  %v54_v29 = vsel %vm50_vm1, %v48_v24, 0.0 }
  0x85   :  { %v34_v16 = vpop.permute.xlu0 %33  ;;  %v44_v26 = vpop.permute.xlu1 %43 }
  0x86   :  { %v47_v19 = vmul.f32 %v34_v16, %v18_v17  ;;  %v49_v30 = vmul.f32 %v44_v26, %v20_v27 }
  0x88   :  { %v52_v23 = vsel %vm50_vm1, %v47_v19, 0.0  ;;  %v56_v32 = vsel %vm50_vm1, %v49_v30, 0.0 }
  0x89   :  { %v53_v28 = vadd.f32 %v52_v23, %v51_v25 }
  0x8b   :  { %v55_v31 = vadd.f32 %v54_v29, %v53_v28 }
  0x8d   :  { %v57_v33 = vadd.f32 %v56_v32, %v55_v31 }
  0x8f   :  { %v58_v34 = vrot.slane %v57_v33, 4 }
  0x91   :  { %v59_v35 = vadd.f32 %v58_v34, %v57_v33 }
  0x93   :  { %v60_v37 = vrot.slane %v59_v35, 2 }
  0x95   :  { %v61_v41 = vadd.f32 %v60_v37, %v59_v35 }
  0x97   :  { %v62_v44 = vrot.slane %v61_v41, 1 }
  0x99   :  { %v63_v50 = vadd.f32 %v62_v44, %v61_v41 }
  0xb2   :  { %v75_v40 = vpop.xlane.xlu0 %74 }
  0xb3   :  { %v94_v47 = vrot.slane %v75_v40, %v93_v42 }
  0xb6   :  { %v87_v43 = vpop.xlane.xlu0 %86 }
  0xb7   :  { %v81_v45 = vpop.xlane.xlu1 %80  ;;  %v106_v46 = vrot.slane %v87_v43, %v93_v42 }
  0xb8   :  { %v100_v48 = vrot.slane %v81_v45, %v93_v42 }
  0xba   :  { %v109_v49 = vsel %vm108_vm2, %v94_v47, %v100_v48 }
  0xbb   :  { %v111_v51 = vsel %vm110_vm3, %v109_v49, %v106_v46 }
  0xbc   :  { %v112_v52 = vadd.f32 %v111_v51, %v63_v50 }
  0xbe   :  { %145 = vtanh.f32 %v112_v52 }
  0xc8   :  { %v146_v53 = vpop.eup %145 }
  0xc9   :  { %v115_v54 = vsel %vm114_vm4, %v146_v53, -inf }
  0xca   :  { %v116_v55 = vrot.slane %v115_v54, 4 }
  0xcc   :  { %v117_v56 = vmax.f32 %v115_v54, %v116_v55 }
  0xce   :  { %v118_v57 = vrot.slane %v117_v56, 2 }
  0xd0   :  { %v119_v58 = vmax.f32 %v117_v56, %v118_v57 }
  0xd2   :  { %v120_v59 = vrot.slane %v119_v58, 1 }
  0xd4   :  { %v121_v60 = vmax.f32 %v119_v58, %v120_v59 }
  0xd6   :  { %v122_v61 = vsub.f32 %v146_v53, %v121_v60 }
  0xd8   :  { %v123_v62 = vmul.f32 1.442695, %v122_v61 }
  0xda   :  { %147 = vpow2.f32 %v123_v62 }
  0xe4   :  { %v148_v63 = vpop.eup %147 }
  0xe5   :  { %v125_v0 = vsel %vm114_vm4, %v148_v63, 0.0 }
  0xe6   :  { %v126_v1 = vrot.slane %v125_v0, 4 }
  0xe8   :  { %v127_v2 = vadd.f32 %v126_v1, %v125_v0 }
  0xea   :  { %v128_v3 = vrot.slane %v127_v2, 2 }
  0xec   :  { %v129_v4 = vadd.f32 %v128_v3, %v127_v2 }
  0xee   :  { %v130_v5 = vrot.slane %v129_v4, 1 }
  0xf0   :  { %v131_v6 = vadd.f32 %v130_v5, %v129_v4 }
  0xf2   :  { %149 = vrcp.f32 %v131_v6 }
  0xfc   :  { %v150_v7 = vpop.eup %149 }
  0xfd   :  { %v133_v8 = vmul.f32 %v150_v7, %v148_v63 }
  0xff   :  { %134 = vst.msk [vmem:[%s223_s4] sm:$0x7] %vm114_vm4, %v133_v8 }

</bundles_post_ra>
